<compile_context>
chip_gen: v7x
topology: tpu7x:2x2x1
jax: 0.10.0
libtpu: 0.0.40
codegen_flags: <defaults>
</compile_context>

<pallas_src>
import jax
import jax.numpy as jnp
from jax.experimental import pallas as pl
from jax.experimental.pallas import tpu as pltpu


def classifier_kernel(patches_ref, wconv_ref, bconv_ref, pool_ref,
                      wcls_ref, bcls_ref, out_ref):
    """Fused conv-as-matmul -> +bias -> ReLU -> avg-pool(matmul) -> linear.

    patches_ref: [B*HW, CKK] bf16    wconv_ref: [CKK, F]  bf16
    bconv_ref:   [1, F]      f32     pool_ref:  [B, B*HW] bf16 (1/HW blocks)
    wcls_ref:    [F, NCP]    bf16    bcls_ref:  [1, NCP]  f32
    out_ref:     [B, NCP]    f32     (NCP = num_classes padded to 128 lanes)
    """
    # Conv expressed as ONE batched matmul over all im2col patches (MXU).
    h = jnp.dot(patches_ref[...], wconv_ref[...],
                preferred_element_type=jnp.float32)             # [B*HW, F]
    h = jnp.maximum(h + bconv_ref[...], 0.0)                    # bias + ReLU
    # Global average pooling as a matmul with the block-constant pooling
    # matrix (value 1/HW) -> folds the mean's scale, keeps the idle MXU busy
    # instead of paying an XLU cross-sublane reduce + VPU divide.
    feat = jnp.dot(pool_ref[...], h.astype(pool_ref.dtype),
                   preferred_element_type=jnp.float32)          # [B, F]
    # Classifier head: Linear(num_features -> num_classes), lane-dense output.
    logits = jnp.dot(feat.astype(wcls_ref.dtype), wcls_ref[...],
                     preferred_element_type=jnp.float32)        # [B, NCP]
    out_ref[...] = (logits + bcls_ref[...]).astype(out_ref.dtype)


def im2col_nchw(x, k=3, pad=1):
    """NCHW -> im2col patches [B, H*W, C*K*K] (plain-JAX glue)."""
    B, C, H, W = x.shape
    xp = jnp.pad(x, ((0, 0), (0, 0), (pad, pad), (pad, pad)))
    cols = []
    for c in range(C):
        for dy in range(k):
            for dx in range(k):
                cols.append(xp[:, c, dy:dy + H, dx:dx + W])     # [B, H, W]
    patches = jnp.stack(cols, axis=-1)                          # [B, H, W, CKK]
    return patches.reshape(B, H * W, C * k * k)


def image_classifier_forward(x, params):
    """x: [B, C, H, W] (NCHW) -> logits [B, num_classes]."""
    wconv, bconv, wcls, bcls = params
    B, C, H, W = x.shape
    HW = H * W
    CKK, F = wconv.shape
    NC = wcls.shape[1]
    NCP = pl.cdiv(NC, 128) * 128            # lane-dense padded class count

    # TODO(synk): for large images, build the k*k shifted views inside the
    # kernel from the raw padded image (accumulating 9 small matmuls) to avoid
    # the ~C*K*K/C HBM expansion of materialized im2col patches.
    patches = im2col_nchw(x).reshape(B * HW, CKK).astype(jnp.bfloat16)

    # Pooling matrix: pool[b, b*HW:(b+1)*HW] = 1/HW (folds the mean scale).
    pool = (jnp.kron(jnp.eye(B, dtype=jnp.float32),
                     jnp.ones((1, HW), dtype=jnp.float32)) / HW
            ).astype(jnp.bfloat16)                              # [B, B*HW]

    wconv_b = wconv.astype(jnp.bfloat16)
    bconv_f = bconv.reshape(1, F).astype(jnp.float32)
    # Zero-fill the padded class columns so the sliced logits are unchanged.
    wcls_p = jnp.zeros((F, NCP), jnp.bfloat16).at[:, :NC].set(
        wcls.astype(jnp.bfloat16))
    bcls_p = jnp.zeros((1, NCP), jnp.float32).at[:, :NC].set(
        bcls.reshape(1, NC).astype(jnp.float32))

    out_padded = pl.pallas_call(
        classifier_kernel,
        out_shape=jax.ShapeDtypeStruct((B, NCP), jnp.float32),
        grid_spec=pl.GridSpec(
            grid=(1,),
            in_specs=[
                pl.BlockSpec((B * HW, CKK), lambda i: (0, 0)),
                pl.BlockSpec((CKK, F), lambda i: (0, 0)),
                pl.BlockSpec((1, F), lambda i: (0, 0)),
                pl.BlockSpec((B, B * HW), lambda i: (0, 0)),
                pl.BlockSpec((F, NCP), lambda i: (0, 0)),
                pl.BlockSpec((1, NCP), lambda i: (0, 0)),
            ],
            out_specs=pl.BlockSpec((B, NCP), lambda i: (0, 0)),
        ),
        compiler_params=pltpu.CompilerParams(
            dimension_semantics=("arbitrary",)),
    )(patches, wconv_b, bconv_f, pool, wcls_p, bcls_p)

    return out_padded[:, :NC]


def reference_forward(x, params):
    """Pure-JAX f32 reference for correctness check."""
    wconv, bconv, wcls, bcls = params
    patches = im2col_nchw(x)                                    # [B, HW, CKK]
    h = jnp.einsum("bpk,kf->bpf", patches, wconv) + bconv       # conv as matmul
    h = jnp.maximum(h, 0.0)
    feat = jnp.mean(h, axis=1)                                  # [B, F]
    return feat @ wcls + bcls                                   # [B, NC]


if __name__ == "__main__":
    # Small shapes consistent with the module's forward.
    B, C_in, H, W = 2, 4, 16, 16
    K = 3
    num_features = 32      # backbone.num_features
    num_classes = 10

    key = jax.random.PRNGKey(0)
    kx, kwc, kbc, kwl, kbl = jax.random.split(key, 5)

    x = jax.random.normal(kx, (B, C_in, H, W), dtype=jnp.float32)

    # Deterministic synthetic parameters (shapes dictated by __init__).
    wconv = jax.random.normal(kwc, (C_in * K * K, num_features),
                              dtype=jnp.float32) * 0.1
    bconv = jax.random.normal(kbc, (1, num_features), dtype=jnp.float32) * 0.1
    wcls = jax.random.normal(kwl, (num_features, num_classes),
                             dtype=jnp.float32) * 0.1
    bcls = jax.random.normal(kbl, (1, num_classes), dtype=jnp.float32) * 0.1
    params = (wconv, bconv, wcls, bcls)

    # TODO(synk): traning_backbone=False would be jax.lax.stop_gradient on the
    # features; it does not change the forward values, so it is omitted.

    out = image_classifier_forward(x, params)
    out = jax.block_until_ready(out)

    ref = reference_forward(x, params)
    assert out.shape == (B, num_classes)
    # bf16 inputs with f32 accumulation -> loosened tolerance vs f32 reference.
    assert jnp.allclose(out, ref, atol=2e-2, rtol=2e-2), (
        float(jnp.max(jnp.abs(out - ref))))

    print("KERNEL_OK")
</pallas_src>

<mosaic_0001>
module attributes {stable_mosaic.version = 11 : i64} {
  func.func @classifier_kernel(%arg0: i32, %arg1: memref<512x36xbf16, #tpu.memory_space<vmem>>, %arg2: memref<36x32xbf16, #tpu.memory_space<vmem>>, %arg3: memref<1x32xf32, #tpu.memory_space<vmem>>, %arg4: memref<2x512xbf16, #tpu.memory_space<vmem>>, %arg5: memref<32x128xbf16, #tpu.memory_space<vmem>>, %arg6: memref<1x128xf32, #tpu.memory_space<vmem>>, %arg7: memref<2x128xf32, #tpu.memory_space<vmem>>) attributes {dimension_semantics = [#tpu.dimension_semantics<arbitrary>], iteration_bounds = array<i64: 1>, scalar_prefetch = 0 : i64, scratch_operands = 0 : i64, tpu.core_type = #tpu.core_type<tc>, window_params = [{pipeline_mode = #tpu.pipeline_mode<synchronous>, transform_indices = @transform_0, window_bounds = array<i64: 512, 36>}, {pipeline_mode = #tpu.pipeline_mode<synchronous>, transform_indices = @transform_1, window_bounds = array<i64: 36, 32>}, {pipeline_mode = #tpu.pipeline_mode<synchronous>, transform_indices = @transform_2, window_bounds = array<i64: 1, 32>}, {pipeline_mode = #tpu.pipeline_mode<synchronous>, transform_indices = @transform_3, window_bounds = array<i64: 2, 512>}, {pipeline_mode = #tpu.pipeline_mode<synchronous>, transform_indices = @transform_4, window_bounds = array<i64: 32, 128>}, {pipeline_mode = #tpu.pipeline_mode<synchronous>, transform_indices = @transform_5, window_bounds = array<i64: 1, 128>}, {pipeline_mode = #tpu.pipeline_mode<synchronous>, transform_indices = @transform_6, window_bounds = array<i64: 2, 128>}]} {
    %c0 = arith.constant 0 : index
    %c0_0 = arith.constant 0 : index
    %0 = vector.load %arg1[%c0, %c0_0] : memref<512x36xbf16, #tpu.memory_space<vmem>>, vector<512x36xbf16>
    %c0_1 = arith.constant 0 : index
    %c0_2 = arith.constant 0 : index
    %1 = vector.load %arg2[%c0_1, %c0_2] : memref<36x32xbf16, #tpu.memory_space<vmem>>, vector<36x32xbf16>
    %cst = arith.constant dense<0.000000e+00> : vector<512x32xf32>
    %2 = tpu.matmul %0, %1, %cst {dimension_numbers = #tpu.dot_dimension_numbers<[1], [0], [0], [1], [0, 0, 1, 1], [], []>} : vector<512x36xbf16>, vector<36x32xbf16>, vector<512x32xf32> -> vector<512x32xf32>
    %c0_3 = arith.constant 0 : index
    %c0_4 = arith.constant 0 : index
    %3 = vector.load %arg3[%c0_3, %c0_4] : memref<1x32xf32, #tpu.memory_space<vmem>>, vector<1x32xf32>
    %4 = vector.broadcast %3 : vector<1x32xf32> to vector<512x32xf32>
    %5 = arith.addf %2, %4 : vector<512x32xf32>
    %cst_5 = arith.constant 0.000000e+00 : f32
    %6 = vector.broadcast %cst_5 : f32 to vector<512x32xf32>
    %7 = arith.maximumf %5, %6 : vector<512x32xf32>
    %c0_6 = arith.constant 0 : index
    %c0_7 = arith.constant 0 : index
    %8 = vector.load %arg4[%c0_6, %c0_7] : memref<2x512xbf16, #tpu.memory_space<vmem>>, vector<2x512xbf16>
    %9 = arith.truncf %7 : vector<512x32xf32> to vector<512x32xbf16>
    %cst_8 = arith.constant dense<0.000000e+00> : vector<2x32xf32>
    %10 = tpu.matmul %8, %9, %cst_8 {dimension_numbers = #tpu.dot_dimension_numbers<[1], [0], [0], [1], [0, 0, 1, 1], [], []>} : vector<2x512xbf16>, vector<512x32xbf16>, vector<2x32xf32> -> vector<2x32xf32>
    %11 = arith.truncf %10 : vector<2x32xf32> to vector<2x32xbf16>
    %c0_9 = arith.constant 0 : index
    %c0_10 = arith.constant 0 : index
    %12 = vector.load %arg5[%c0_9, %c0_10] : memref<32x128xbf16, #tpu.memory_space<vmem>>, vector<32x128xbf16>
    %cst_11 = arith.constant dense<0.000000e+00> : vector<2x128xf32>
    %13 = tpu.matmul %11, %12, %cst_11 {dimension_numbers = #tpu.dot_dimension_numbers<[1], [0], [0], [1], [0, 0, 1, 1], [], []>} : vector<2x32xbf16>, vector<32x128xbf16>, vector<2x128xf32> -> vector<2x128xf32>
    %c0_12 = arith.constant 0 : index
    %c0_13 = arith.constant 0 : index
    %14 = vector.load %arg6[%c0_12, %c0_13] : memref<1x128xf32, #tpu.memory_space<vmem>>, vector<1x128xf32>
    %15 = vector.broadcast %14 : vector<1x128xf32> to vector<2x128xf32>
    %16 = arith.addf %13, %15 : vector<2x128xf32>
    %c0_14 = arith.constant 0 : index
    %c0_15 = arith.constant 0 : index
    %17 = vector.load %arg7[%c0_14, %c0_15] : memref<2x128xf32, #tpu.memory_space<vmem>>, vector<2x128xf32>
    tpu.vector_store %arg7[%c0_14, %c0_15], %16 {strides = array<i32>} : memref<2x128xf32, #tpu.memory_space<vmem>>, vector<2x128xf32>,
    return
  }
  func.func @transform_0(%arg0: i32) -> (i32, i32) {
    %c0_i32 = arith.constant 0 : i32
    %c0_i32_0 = arith.constant 0 : i32
    %c0_i32_1 = arith.constant 0 : i32
    return %c0_i32, %c0_i32_0 : i32, i32
  }
  func.func @transform_1(%arg0: i32) -> (i32, i32) {
    %c0_i32 = arith.constant 0 : i32
    %c0_i32_0 = arith.constant 0 : i32
    %c0_i32_1 = arith.constant 0 : i32
    return %c0_i32, %c0_i32_0 : i32, i32
  }
  func.func @transform_2(%arg0: i32) -> (i32, i32) {
    %c0_i32 = arith.constant 0 : i32
    %c0_i32_0 = arith.constant 0 : i32
    %c0_i32_1 = arith.constant 0 : i32
    return %c0_i32, %c0_i32_0 : i32, i32
  }
  func.func @transform_3(%arg0: i32) -> (i32, i32) {
    %c0_i32 = arith.constant 0 : i32
    %c0_i32_0 = arith.constant 0 : i32
    %c0_i32_1 = arith.constant 0 : i32
    return %c0_i32, %c0_i32_0 : i32, i32
  }
  func.func @transform_4(%arg0: i32) -> (i32, i32) {
    %c0_i32 = arith.constant 0 : i32
    %c0_i32_0 = arith.constant 0 : i32
    %c0_i32_1 = arith.constant 0 : i32
    return %c0_i32, %c0_i32_0 : i32, i32
  }
  func.func @transform_5(%arg0: i32) -> (i32, i32) {
    %c0_i32 = arith.constant 0 : i32
    %c0_i32_0 = arith.constant 0 : i32
    %c0_i32_1 = arith.constant 0 : i32
    return %c0_i32, %c0_i32_0 : i32, i32
  }
  func.func @transform_6(%arg0: i32) -> (i32, i32) {
    %c0_i32 = arith.constant 0 : i32
    %c0_i32_0 = arith.constant 0 : i32
    %c0_i32_1 = arith.constant 0 : i32
    return %c0_i32, %c0_i32_0 : i32, i32
  }
}

</mosaic_0001>

<bundles_post_ra>
// kernel: tpu_custom_call.1
= control target key start
LH: loop header
LB: loop body
LE: loop exit
PB: predicated region body
PF: predicated region fallthrough
CT: control target
= control target key end

     0   :  { %vm276_vm0 = vcmask 293888   ;;  %vm373_vm1 = vcmask 1041408   ;;  %s1594_s0 = inlined_call_operand.vmem [shape: bf16[512,36], index: 0, kind: input, shape index: {}]   ;;  %s1595_s1 = inlined_call_operand.vmem [shape: bf16[36,32], index: 1, kind: input, shape index: {}]   ;;  %s1596_s2 = inlined_call_operand.vmem [shape: f32[1,32], index: 2, kind: input, shape index: {}]   ;;  %s1597_s3 = inlined_call_operand.vmem [shape: bf16[2,512], index: 3, kind: input, shape index: {}]   ;;  %s1598_s4 = inlined_call_operand.vmem [shape: bf16[32,128], index: 4, kind: input, shape index: {}]   ;;  %s1599_s5 = inlined_call_operand.vmem [shape: f32[1,128], index: 5, kind: input, shape index: {}]   ;;  %s1600_s6 = inlined_call_operand.hbm [shape: f32[2,128], index: 6, kind: output, shape index: {}]  }
   0x1   :  { %v1200_v0 = vld [vmem:[%s1595_s1] sm:$0xff]   ;;  %v1201_v1 = vld [vmem:[%s1595_s1 + $0x8] sm:$0xff]   ;;  %v1202_v2 = vld [vmem:[%s1595_s1 + $0x10] ss:$0 sps:$4 sm:$0x33]  }
   0x2   :  { %1110 = vmatprep.subr.bf16.mxu0 %v1200_v0  ;;  %v1203_v3 = vld [vmem:[%s1594_s0] sm:$0xff]   ;;  %1188 = vmatprep.subr.bf16.mxu1 %v1200_v0  ;;  %v375_v4 = vsel %vm373_vm1, %v1202_v2, 0  ;;  %v1204_v5 = vld [vmem:[%s1594_s0 + $0x8] sm:$0xff]   ;;  %v1205_v6 = vld [vmem:[%s1594_s0 + $0x10] sm:$0xff]  }
   0x3   :  { %1111 = vmatpush3.bf16.msra.mxu0 %v1200_v0  ;;  %1191 = vmatpush3.bf16.msra.mxu1 %v1200_v0  ;;  %v1206_v7 = vld [vmem:[%s1594_s0 + $0x18] sm:$0xff]   ;;  %v1218_v8 = vld [vmem:[%s1594_s0 + $0xb0] sm:$0xff]   ;;  %v1207_v9 = vld [vmem:[%s1594_s0 + $0x20] sm:$0xff]  }
   0x4   :  { %1112 = vmatprep.subr.bf16.mxu0 %v1201_v1  ;;  %1116 = vmatprep.mubr.msk.bf16.mxu0 %vm276_vm0, %v1203_v3  ;;  %v1220_v10 = vld [vmem:[%s1594_s0 + $0xb8] sm:$0xff]   ;;  %v1221_v11 = vld [vmem:[%s1594_s0 + $0xc0] sm:$0xff]   ;;  %v1208_v12 = vld [vmem:[%s1594_s0 + $0x28] sm:$0xff]  }
   0x5   :  { %1189 = vmatprep.subr.bf16.mxu1 %v1201_v1  ;;  %1160 = vmatprep.mubr.msk.bf16.mxu1 %vm276_vm0, %v1218_v8  ;;  %v1209_v13 = vld [vmem:[%s1594_s0 + $0x30] sm:$0xff]   ;;  %v1223_v14 = vld [vmem:[%s1594_s0 + $0xc8] sm:$0xff]   ;;  %v1210_v16 = vld [vmem:[%s1594_s0 + $0x38] sm:$0xff]  }
   0x6   :  { %v1225_v15 = vld [vmem:[%s1594_s0 + $0xd0] sm:$0xff]   ;;  %v1211_v17 = vld [vmem:[%s1594_s0 + $0x40] sm:$0xff]   ;;  %v1227_v18 = vld [vmem:[%s1594_s0 + $0xd8] sm:$0xff]  }
   0x7   :  { %1113 = vmatpush3.bf16.msra.mxu0 %v1201_v1  ;;  %1192 = vmatpush3.bf16.msra.mxu1 %v1201_v1  ;;  %v1229_v19 = vld [vmem:[%s1594_s0 + $0xe0] sm:$0xff]  }
   0x8   :  { %1194 = vmatprep.subr.msk.bf16.mxu0 %vm373_vm1, %v1202_v2  ;;  %1195 = vmatprep.subr.msk.bf16.mxu1 %vm373_vm1, %v1202_v2 }
   0xb   :  { %1115 = vmatpush3.bf16.msra.mxu0 %v375_v4  ;;  %1193 = vmatpush3.bf16.msra.mxu1 %v375_v4 }
   0xe   :  { %1117 = vmatmul.mubr.msk.bf16.vlgmr.msra.gmra.mrb[0].mxu0 %vm276_vm0, %v1204_v5  ;;  %1161 = vmatmul.mubr.msk.bf16.vlgmr.msra.gmra.mrb[0].mxu1 %vm276_vm0, %v1220_v10 }
   0xf   :  { %1120 = vmatprep.mubr.msk.bf16.mxu0 %vm276_vm0, %v1205_v6  ;;  %1164 = vmatprep.mubr.msk.bf16.mxu1 %vm276_vm0, %v1221_v11 }
  0x16   :  { %1121 = vmatmul.mubr.msk.bf16.gmra.mrb[4].mxu0 %vm276_vm0, %v1206_v7  ;;  %1165 = vmatmul.mubr.msk.bf16.gmra.mrb[4].mxu1 %vm276_vm0, %v1223_v14 }
  0x17   :  { %1124 = vmatprep.mubr.msk.bf16.mxu0 %vm276_vm0, %v1207_v9  ;;  %1168 = vmatprep.mubr.msk.bf16.mxu1 %vm276_vm0, %v1225_v15 }
  0x1e   :  { %1125 = vmatmul.mubr.msk.bf16.gmra.mrb[8].mxu0 %vm276_vm0, %v1208_v12 }
  0x1f   :  { %1128 = vmatprep.mubr.msk.bf16.mxu0 %vm276_vm0, %v1209_v13 }
  0x20   :  { %11 = vsyncpa [#allocation3], 0  ;;  %1169 = vmatmul.mubr.msk.bf16.gmra.mrb[8].mxu1 %vm276_vm0, %v1227_v18  ;;  %v1212_v20 = vld [vmem:[%s1594_s0 + $0x48] sm:$0xff]   ;;  %v1213_v22 = vld [vmem:[%s1594_s0 + $0x50] sm:$0xff]   ;;  %v1261_v36 = vmov 1966171168   ;;  %v775_v38 = vlaneseq }
  0x21   :  { %1172 = vmatprep.mubr.msk.bf16.mxu1 %vm276_vm0, %v1229_v19  ;;  %v1231_v21 = vld [vmem:[%s1594_s0 + $0xe8] sm:$0xff]   ;;  %v1233_v23 = vld [vmem:[%s1594_s0 + $0xf0] sm:$0xff]   ;;  %v1214_v24 = vld [vmem:[%s1594_s0 + $0x58] sm:$0xff]   ;;  %v773_v37 = vunpack.c.l.s4 %v1261_v36  ;;  %vm1263_vm2 = vmmov 0   ;;  %vm896_vm3 = vcmask 261120  }
  0x22   :  { %v1234_v25 = vld [vmem:[%s1594_s0 + $0xf8] sm:$0xff]   ;;  %v1215_v26 = vld [vmem:[%s1594_s0 + $0x60] sm:$0xff]   ;;  %v1216_v27 = vld [vmem:[%s1594_s0 + $0x68] sm:$0xff]   ;;  %v776_v40 = vshrl.u32 %v775_v38, 7 }
  0x23   :  { %v1217_v28 = vld [vmem:[%s1594_s0 + $0x70] sm:$0xff]   ;;  %v1219_v29 = vld [vmem:[%s1594_s0 + $0x78] sm:$0xff]   ;;  %v1222_v30 = vld [vmem:[%s1594_s0 + $0x80] sm:$0xff]   ;;  %v774_v39 = vunpack.c.0.s8 %v773_v37 }
  0x24   :  { %v1224_v31 = vld [vmem:[%s1594_s0 + $0x88] sm:$0xff]   ;;  %v1226_v32 = vld [vmem:[%s1594_s0 + $0x90] sm:$0xff]   ;;  %v1228_v33 = vld [vmem:[%s1594_s0 + $0x98] sm:$0xff]  }
  0x25   :  { %v1230_v34 = vld [vmem:[%s1594_s0 + $0xa0] sm:$0xff]   ;;  %v1232_v35 = vld [vmem:[%s1594_s0 + $0xa8] sm:$0xff]   ;;  %v777_v43 = vsub.s32 %v774_v39, %v776_v40 }
  0x26   :  { %1129 = vmatmul.mubr.msk.bf16.gmra.mrb[12].mxu0 %vm276_vm0, %v1210_v16  ;;  %v1023_v41 = vld.sshfl [vmem:[%s1597_s3] sm:$0x33 pattern:$0x75316420] }
  0x27   :  { %1132 = vmatprep.mubr.msk.bf16.mxu0 %vm276_vm0, %v1211_v17  ;;  %v771_v42 = vcombine.high %v1023_v41, %v1023_v41  ;;  %v1442_v45 = vrot.slane %v1023_v41, %v777_v43  ;;  %v1448_v46 = vld [vmem:[%s1596_s2] ss:$0 sm:$0xff] }
  0x28   :  { %1173 = vmatmul.mubr.msk.bf16.gmra.mrb[12].mxu1 %vm276_vm0, %v1231_v21 }
  0x29   :  { %1176 = vmatprep.mubr.msk.bf16.mxu1 %vm276_vm0, %v1233_v23  ;;  %v1440_v44 = vrot.slane %v771_v42, %v777_v43 }
  0x2e   :  { %1133 = vmatmul.mubr.msk.bf16.gmra.mrb[16].mxu0 %vm276_vm0, %v1212_v20 }
  0x2f   :  { %1136 = vmatprep.mubr.msk.bf16.mxu0 %vm276_vm0, %v1213_v22 }
  0x30   :  { %1177 = vmatmul.mubr.msk.bf16.gmra.mrb[16].mxu1 %vm276_vm0, %v1234_v25 }
  0x31   :  { %824 = vmatprep.mubr.bf16.mxu1 %v1440_v44 }
  0x36   :  { %1137 = vmatmul.mubr.msk.bf16.gmra.mrb[20].mxu0 %vm276_vm0, %v1214_v24 }
  0x37   :  { %1140 = vmatprep.mubr.msk.bf16.mxu0 %vm276_vm0, %v1215_v26 }
  0x3e   :  { %1141 = vmatmul.mubr.msk.bf16.gmra.mrb[24].mxu0 %vm276_vm0, %v1216_v27 }
  0x3f   :  { %1144 = vmatprep.mubr.msk.bf16.mxu0 %vm276_vm0, %v1217_v28 }
  0x46   :  { %1145 = vmatmul.mubr.msk.bf16.gmra.mrb[28].mxu0 %vm276_vm0, %v1219_v29 }
  0x47   :  { %1148 = vmatprep.mubr.msk.bf16.mxu0 %vm276_vm0, %v1222_v30 }
  0x4e   :  { %1149 = vmatmul.mubr.msk.bf16.gmra.mrb[32].mxu0 %vm276_vm0, %v1224_v31 }
  0x4f   :  { %1152 = vmatprep.mubr.msk.bf16.mxu0 %vm276_vm0, %v1226_v32 }
  0x56   :  { %1153 = vmatmul.mubr.msk.bf16.gmra.mrb[36].mxu0 %vm276_vm0, %v1228_v33 }
  0x57   :  { %1156 = vmatprep.mubr.msk.bf16.mxu0 %vm276_vm0, %v1230_v34 }
  0x5e   :  { %1157 = vmatmul.mubr.msk.bf16.gmra.mrb[40].mxu0 %vm276_vm0, %v1232_v35 }
  0xe1   :  { %v1118_v47 = vpop.f32.mrb[0].mxu0  ;;  %v1162_v62 = vpop.f32.mrb[0].mxu1 }
  0xe2   :  { %v420_v48 = vadd.f32 %v1118_v47, %v1448_v46  ;;  %v411_v49 = vpop.f32.mrb[1].mxu0  ;;  %v596_v1 = vadd.f32 %v1162_v62, %v1448_v46  ;;  %v587_v2 = vpop.f32.mrb[1].mxu1 }
  0xe3   :  { %v412_v50 = vadd.f32 %v1448_v46, %v411_v49  ;;  %v1119_v51 = vpop.f32.mrb[2].mxu0  ;;  %v588_v5 = vadd.f32 %v1448_v46, %v587_v2  ;;  %v1163_v6 = vpop.f32.mrb[2].mxu1 }
  0xe4   :  { %v423_v52 = vadd.f32 %v1119_v51, %v1448_v46  ;;  %v414_v53 = vpop.f32.mrb[3].mxu0  ;;  %v668_v55 = vmax.f32 %v420_v48, 0.0  ;;  %v712_v9 = vmax.f32 %v596_v1, 0.0  ;;  %v599_v10 = vadd.f32 %v1163_v6, %v1448_v46  ;;  %v590_v11 = vpop.f32.mrb[3].mxu1 }
  0xe5   :  { %v415_v54 = vadd.f32 %v1448_v46, %v414_v53  ;;  %v666_v57 = vmax.f32 %v412_v50, 0.0  ;;  %v710_v13 = vmax.f32 %v588_v5, 0.0  ;;  %v591_v14 = vadd.f32 %v1448_v46, %v590_v11 }
  0xe6   :  { %v669_v56 = vmax.f32 %v423_v52, 0.0  ;;  %v713_v17 = vmax.f32 %v599_v10, 0.0 }
  0xe7   :  { %v667_v58 = vmax.f32 %v415_v54, 0.0  ;;  %v711_v20 = vmax.f32 %v591_v14, 0.0 }
  0xe8   :  { %v1454_v59 = vpack.c.bf16 %v669_v56, %v668_v55  ;;  %v1468_v22 = vpack.c.bf16 %v713_v17, %v712_v9 }
  0xe9   :  { %v1456_v60 = vpack.c.bf16 %v667_v58, %v666_v57  ;;  %v1122_v61 = vpop.f32.mrb[4].mxu0  ;;  %v1472_v25 = vpack.c.bf16 %v711_v20, %v710_v13  ;;  %v1166_v26 = vpop.f32.mrb[4].mxu1 }
  0xea   :  { %v436_v63 = vadd.f32 %v1122_v61, %v1448_v46  ;;  %v427_v0 = vpop.f32.mrb[5].mxu0  ;;  %v612_v29 = vadd.f32 %v1166_v26, %v1448_v46  ;;  %v603_v30 = vpop.f32.mrb[5].mxu1 }
  0xeb   :  { %v428_v3 = vadd.f32 %v1448_v46, %v427_v0  ;;  %v1123_v4 = vpop.f32.mrb[6].mxu0  ;;  %v604_v33 = vadd.f32 %v1448_v46, %v603_v30  ;;  %v1167_v34 = vpop.f32.mrb[6].mxu1 }
  0xec   :  { %v439_v7 = vadd.f32 %v1123_v4, %v1448_v46  ;;  %v430_v8 = vpop.f32.mrb[7].mxu0  ;;  %v672_v15 = vmax.f32 %v436_v63, 0.0  ;;  %v716_v37 = vmax.f32 %v612_v29, 0.0  ;;  %v615_v38 = vadd.f32 %v1167_v34, %v1448_v46  ;;  %v606_v39 = vpop.f32.mrb[7].mxu1 }
  0xed   :  { %v431_v12 = vadd.f32 %v1448_v46, %v430_v8  ;;  %v670_v18 = vmax.f32 %v428_v3, 0.0  ;;  %v714_v41 = vmax.f32 %v604_v33, 0.0  ;;  %v607_v42 = vadd.f32 %v1448_v46, %v606_v39 }
  0xee   :  { %v673_v16 = vmax.f32 %v439_v7, 0.0  ;;  %v717_v48 = vmax.f32 %v615_v38, 0.0 }
  0xef   :  { %v671_v19 = vmax.f32 %v431_v12, 0.0  ;;  %v715_v51 = vmax.f32 %v607_v42, 0.0 }
  0xf0   :  { %v1466_v21 = vpack.c.bf16 %v673_v16, %v672_v15  ;;  %v1484_v53 = vpack.c.bf16 %v717_v48, %v716_v37 }
  0xf1   :  { %v1470_v23 = vpack.c.bf16 %v671_v19, %v670_v18  ;;  %v1126_v24 = vpop.f32.mrb[8].mxu0  ;;  %v1488_v56 = vpack.c.bf16 %v715_v51, %v714_v41 }
  0xf2   :  { %v452_v27 = vadd.f32 %v1126_v24, %v1448_v46  ;;  %v443_v28 = vpop.f32.mrb[9].mxu0 }
  0xf3   :  { %v444_v31 = vadd.f32 %v1448_v46, %v443_v28  ;;  %v1127_v32 = vpop.f32.mrb[10].mxu0  ;;  %v1170_v57 = vpop.f32.mrb[8].mxu1 }
  0xf4   :  { %v455_v35 = vadd.f32 %v1127_v32, %v1448_v46  ;;  %v446_v36 = vpop.f32.mrb[11].mxu0  ;;  %v676_v43 = vmax.f32 %v452_v27, 0.0  ;;  %v628_v62 = vadd.f32 %v1170_v57, %v1448_v46  ;;  %v619_v63 = vpop.f32.mrb[9].mxu1 }
  0xf5   :  { %v447_v40 = vadd.f32 %v1448_v46, %v446_v36  ;;  %v674_v49 = vmax.f32 %v444_v31, 0.0  ;;  %v620_v2 = vadd.f32 %v1448_v46, %v619_v63  ;;  %v1171_v3 = vpop.f32.mrb[10].mxu1 }
  0xf6   :  { %v677_v47 = vmax.f32 %v455_v35, 0.0  ;;  %v720_v6 = vmax.f32 %v628_v62, 0.0  ;;  %v631_v7 = vadd.f32 %v1171_v3, %v1448_v46  ;;  %v622_v8 = vpop.f32.mrb[11].mxu1 }
  0xf7   :  { %v675_v50 = vmax.f32 %v447_v40, 0.0  ;;  %v718_v10 = vmax.f32 %v620_v2, 0.0  ;;  %v623_v11 = vadd.f32 %v1448_v46, %v622_v8 }
  0xf8   :  { %v1482_v52 = vpack.c.bf16 %v677_v47, %v676_v43  ;;  %v721_v14 = vmax.f32 %v631_v7, 0.0 }
  0xf9   :  { %v1486_v54 = vpack.c.bf16 %v675_v50, %v674_v49  ;;  %v1130_v55 = vpop.f32.mrb[12].mxu0  ;;  %v719_v17 = vmax.f32 %v623_v11, 0.0 }
  0xfa   :  { %v468_v58 = vadd.f32 %v1130_v55, %v1448_v46  ;;  %v459_v61 = vpop.f32.mrb[13].mxu0  ;;  %v1500_v19 = vpack.c.bf16 %v721_v14, %v720_v6 }
  0xfb   :  { %v460_v0 = vadd.f32 %v1448_v46, %v459_v61  ;;  %v1131_v1 = vpop.f32.mrb[14].mxu0  ;;  %v1504_v26 = vpack.c.bf16 %v719_v17, %v718_v10  ;;  %v1174_v27 = vpop.f32.mrb[12].mxu1 }
  0xfc   :  { %v471_v4 = vadd.f32 %v1131_v1, %v1448_v46  ;;  %v462_v5 = vpop.f32.mrb[15].mxu0  ;;  %v680_v12 = vmax.f32 %v468_v58, 0.0  ;;  %v644_v30 = vadd.f32 %v1174_v27, %v1448_v46  ;;  %v635_v31 = vpop.f32.mrb[13].mxu1 }
  0xfd   :  { %v463_v9 = vadd.f32 %v1448_v46, %v462_v5  ;;  %v678_v15 = vmax.f32 %v460_v0, 0.0  ;;  %v636_v34 = vadd.f32 %v1448_v46, %v635_v31  ;;  %v1175_v35 = vpop.f32.mrb[14].mxu1 }
  0xfe   :  { %v681_v13 = vmax.f32 %v471_v4, 0.0  ;;  %v724_v38 = vmax.f32 %v644_v30, 0.0  ;;  %v647_v39 = vadd.f32 %v1175_v35, %v1448_v46  ;;  %v638_v40 = vpop.f32.mrb[15].mxu1 }
  0xff   :  { %v679_v16 = vmax.f32 %v463_v9, 0.0  ;;  %v722_v42 = vmax.f32 %v636_v34, 0.0  ;;  %v639_v43 = vadd.f32 %v1448_v46, %v638_v40 }
 0x100   :  { %v1498_v18 = vpack.c.bf16 %v681_v13, %v680_v12  ;;  %v725_v49 = vmax.f32 %v647_v39, 0.0 }
 0x101   :  { %v1502_v20 = vpack.c.bf16 %v679_v16, %v678_v15  ;;  %v1134_v24 = vpop.f32.mrb[16].mxu0  ;;  %v723_v55 = vmax.f32 %v639_v43, 0.0 }
 0x102   :  { %v484_v28 = vadd.f32 %v1134_v24, %v1448_v46  ;;  %v475_v29 = vpop.f32.mrb[17].mxu0  ;;  %v1514_v58 = vpack.c.bf16 %v725_v49, %v724_v38 }
 0x103   :  { %v476_v32 = vadd.f32 %v1448_v46, %v475_v29  ;;  %v1135_v33 = vpop.f32.mrb[18].mxu0  ;;  %v1516_v63 = vpack.c.bf16 %v723_v55, %v722_v42  ;;  %v1178_v0 = vpop.f32.mrb[16].mxu1 }
 0x104   :  { %v487_v36 = vadd.f32 %v1135_v33, %v1448_v46  ;;  %v478_v37 = vpop.f32.mrb[19].mxu0  ;;  %v684_v47 = vmax.f32 %v484_v28, 0.0  ;;  %v660_v3 = vadd.f32 %v1178_v0, %v1448_v46  ;;  %v651_v4 = vpop.f32.mrb[17].mxu1 }
 0x105   :  { %v479_v41 = vadd.f32 %v1448_v46, %v478_v37  ;;  %v682_v50 = vmax.f32 %v476_v32, 0.0  ;;  %v652_v7 = vadd.f32 %v1448_v46, %v651_v4  ;;  %v1179_v8 = vpop.f32.mrb[18].mxu1 }
 0x106   :  { %v685_v48 = vmax.f32 %v487_v36, 0.0  ;;  %v728_v11 = vmax.f32 %v660_v3, 0.0  ;;  %v663_v12 = vadd.f32 %v1179_v8, %v1448_v46  ;;  %v654_v13 = vpop.f32.mrb[19].mxu1 }
 0x107   :  { %v683_v51 = vmax.f32 %v479_v41, 0.0  ;;  %v726_v15 = vmax.f32 %v652_v7, 0.0  ;;  %v655_v16 = vadd.f32 %v1448_v46, %v654_v13 }
 0x108   :  { %v740_v57 = vpack.c.bf16 %v685_v48, %v684_v47  ;;  %v729_v27 = vmax.f32 %v663_v12, 0.0 }
 0x109   :  { %v739_v61 = vpack.c.bf16 %v683_v51, %v682_v50  ;;  %v1138_v62 = vpop.f32.mrb[20].mxu0  ;;  %v727_v30 = vmax.f32 %v655_v16, 0.0 }
 0x10a   :  { %v500_v1 = vadd.f32 %v1138_v62, %v1448_v46  ;;  %v491_v2 = vpop.f32.mrb[21].mxu0 }
 0x10b   :  { %v492_v5 = vadd.f32 %v1448_v46, %v491_v2  ;;  %v1139_v6 = vpop.f32.mrb[22].mxu0  ;;  %1063 = vmatprep.subr.bf16.mxu1 %v739_v61  ;;  %v1530_v34 = vpack.c.bf16 %v727_v30, %v726_v15 }
 0x10c   :  { %v503_v9 = vadd.f32 %v1139_v6, %v1448_v46  ;;  %v494_v10 = vpop.f32.mrb[23].mxu0  ;;  %1064 = vmatpush3.bf16.msra.mxu1 %v1456_v60  ;;  %v688_v17 = vmax.f32 %v500_v1, 0.0  ;;  %v1528_v60 = vpack.c.bf16 %v729_v27, %v728_v11 }
 0x10d   :  { %v495_v14 = vadd.f32 %v1448_v46, %v494_v10  ;;  %1065 = vmatprep.subr.bf16.mxu1 %v740_v57  ;;  %v686_v28 = vmax.f32 %v492_v5, 0.0 }
 0x10e   :  { %v689_v24 = vmax.f32 %v503_v9, 0.0 }
 0x10f   :  { %v687_v29 = vmax.f32 %v495_v14, 0.0 }
 0x110   :  { %v742_v31 = vpack.c.bf16 %v689_v24, %v688_v17  ;;  %1066 = vmatpush3.bf16.msra.mxu1 %v1454_v59  ;;  %v787_v17 = vcombine.high %v1440_v44, %v1440_v44 }
 0x111   :  { %v741_v32 = vpack.c.bf16 %v687_v29, %v686_v28  ;;  %v1142_v33 = vpop.f32.mrb[24].mxu0 }
 0x112   :  { %v516_v35 = vadd.f32 %v1142_v33, %v1448_v46  ;;  %v507_v36 = vpop.f32.mrb[25].mxu0 }
 0x113   :  { %v508_v37 = vadd.f32 %v1448_v46, %v507_v36  ;;  %v1143_v38 = vpop.f32.mrb[26].mxu0  ;;  %1067 = vmatprep.subr.bf16.mxu1 %v741_v32 }
 0x114   :  { %v519_v39 = vadd.f32 %v1143_v38, %v1448_v46  ;;  %v510_v40 = vpop.f32.mrb[27].mxu0  ;;  %1068 = vmatpush3.bf16.msra.mxu1 %v1470_v23  ;;  %v692_v41 = vmax.f32 %v516_v35, 0.0 }
 0x115   :  { %v511_v59 = vadd.f32 %v1448_v46, %v510_v40  ;;  %1069 = vmatprep.subr.bf16.mxu1 %v742_v31  ;;  %v690_v43 = vmax.f32 %v508_v37, 0.0 }
 0x116   :  { %v693_v42 = vmax.f32 %v519_v39, 0.0 }
 0x117   :  { %v691_v47 = vmax.f32 %v511_v59, 0.0 }
 0x118   :  { %v744_v48 = vpack.c.bf16 %v693_v42, %v692_v41  ;;  %1070 = vmatpush3.bf16.msra.mxu1 %v1466_v21 }
 0x119   :  { %v743_v49 = vpack.c.bf16 %v691_v47, %v690_v43  ;;  %v1146_v50 = vpop.f32.mrb[28].mxu0 }
 0x11a   :  { %v532_v51 = vadd.f32 %v1146_v50, %v1448_v46  ;;  %v523_v55 = vpop.f32.mrb[29].mxu0 }
 0x11b   :  { %v524_v57 = vadd.f32 %v1448_v46, %v523_v55  ;;  %v1147_v61 = vpop.f32.mrb[30].mxu0  ;;  %1071 = vmatprep.subr.bf16.mxu1 %v743_v49 }
 0x11c   :  { %v535_v23 = vadd.f32 %v1147_v61, %v1448_v46  ;;  %v526_v62 = vpop.f32.mrb[31].mxu0  ;;  %1072 = vmatpush3.bf16.msra.mxu1 %v1486_v54  ;;  %v696_v1 = vmax.f32 %v532_v51, 0.0 }
 0x11d   :  { %v527_v0 = vadd.f32 %v1448_v46, %v526_v62  ;;  %1073 = vmatprep.subr.bf16.mxu1 %v744_v48  ;;  %v694_v21 = vmax.f32 %v524_v57, 0.0 }
 0x11e   :  { %v697_v2 = vmax.f32 %v535_v23, 0.0 }
 0x11f   :  { %v695_v3 = vmax.f32 %v527_v0, 0.0 }
 0x120   :  { %v746_v4 = vpack.c.bf16 %v697_v2, %v696_v1  ;;  %1074 = vmatpush3.bf16.msra.mxu1 %v1482_v52  ;;  %v1024_v2 = vld [vmem:[%s1599_s5] ss:$0 sm:$0xff] }
 0x121   :  { %v745_v5 = vpack.c.bf16 %v695_v3, %v694_v21  ;;  %v1150_v6 = vpop.f32.mrb[32].mxu0 }
 0x122   :  { %v548_v7 = vadd.f32 %v1150_v6, %v1448_v46  ;;  %v539_v8 = vpop.f32.mrb[33].mxu0 }
 0x123   :  { %v540_v9 = vadd.f32 %v1448_v46, %v539_v8  ;;  %1075 = vmatprep.subr.bf16.mxu1 %v745_v5  ;;  %v1151_v10 = vpop.f32.mrb[34].mxu0 }
 0x124   :  { %v700_v54 = vmax.f32 %v548_v7, 0.0  ;;  %v551_v11 = vadd.f32 %v1151_v10, %v1448_v46  ;;  %1076 = vmatpush3.bf16.msra.mxu1 %v1502_v20  ;;  %v542_v12 = vpop.f32.mrb[35].mxu0 }
 0x125   :  { %v543_v13 = vadd.f32 %v1448_v46, %v542_v12  ;;  %1077 = vmatprep.subr.bf16.mxu1 %v746_v4  ;;  %v698_v52 = vmax.f32 %v540_v9, 0.0 }
 0x126   :  { %v701_v14 = vmax.f32 %v551_v11, 0.0 }
 0x127   :  { %v699_v15 = vmax.f32 %v543_v13, 0.0 }
 0x128   :  { %v748_v16 = vpack.c.bf16 %v701_v14, %v700_v54  ;;  %1078 = vmatpush3.bf16.msra.mxu1 %v1498_v18 }
 0x129   :  { %v747_v24 = vpack.c.bf16 %v699_v15, %v698_v52  ;;  %v1154_v27 = vpop.f32.mrb[36].mxu0  ;;  %1085 = vmatprep.subr.bf16.mxu1 %v1488_v56 }
 0x12a   :  { %v564_v28 = vadd.f32 %v1154_v27, %v1448_v46  ;;  %v555_v20 = vpop.f32.mrb[37].mxu0 }
 0x12b   :  { %v556_v29 = vadd.f32 %v1448_v46, %v555_v20  ;;  %v1155_v30 = vpop.f32.mrb[38].mxu0  ;;  %825 = vmatmul.mubr.bf16.vlgmr.msra.gmra.mrb[20].mxu1 %v1442_v45 }
 0x12c   :  { %v704_v31 = vmax.f32 %v564_v28, 0.0  ;;  %v567_v32 = vadd.f32 %v1155_v30, %v1448_v46  ;;  %1086 = vmatpush3.bf16.msra.mxu1 %v747_v24  ;;  %v558_v18 = vpop.f32.mrb[39].mxu0  ;;  %864 = vmatprep.mubr.bf16.mxu1 %v787_v17 }
 0x12d   :  { %v559_v44 = vadd.f32 %v1448_v46, %v558_v18  ;;  %1087 = vmatprep.subr.bf16.mxu1 %v1484_v53  ;;  %v702_v56 = vmax.f32 %v556_v29, 0.0 }
 0x12e   :  { %v705_v33 = vmax.f32 %v567_v32, 0.0 }
 0x12f   :  { %v703_v35 = vmax.f32 %v559_v44, 0.0 }
 0x130   :  { %v750_v36 = vpack.c.bf16 %v705_v33, %v704_v31  ;;  %1088 = vmatpush3.bf16.msra.mxu1 %v748_v16 }
 0x131   :  { %v749_v37 = vpack.c.bf16 %v703_v35, %v702_v56  ;;  %v1158_v38 = vpop.f32.mrb[40].mxu0  ;;  %1089 = vmatprep.subr.bf16.mxu1 %v1504_v26 }
 0x132   :  { %v580_v39 = vadd.f32 %v1158_v38, %v1448_v46  ;;  %v571_v40 = vpop.f32.mrb[41].mxu0 }
 0x133   :  { %v572_v59 = vadd.f32 %v1448_v46, %v571_v40  ;;  %v1159_v41 = vpop.f32.mrb[42].mxu0 }
 0x134   :  { %v708_v42 = vmax.f32 %v580_v39, 0.0  ;;  %v583_v43 = vadd.f32 %v1159_v41, %v1448_v46  ;;  %1090 = vmatpush3.bf16.msra.mxu1 %v749_v37  ;;  %v574_v53 = vpop.f32.mrb[43].mxu0 }
 0x135   :  { %v575_v47 = vadd.f32 %v1448_v46, %v574_v53  ;;  %1091 = vmatprep.subr.bf16.mxu1 %v1500_v19  ;;  %v706_v49 = vmax.f32 %v572_v59, 0.0  ;;  %v786_v46 = vcombine.high %v1442_v45, %v1442_v45  ;;  %v1235_v19 = vld [vmem:[%s1598_s4] sm:$0xff]  }
 0x136   :  { %v709_v48 = vmax.f32 %v583_v43, 0.0 }
 0x137   :  { %v707_v50 = vmax.f32 %v575_v47, 0.0 }
 0x138   :  { %v752_v51 = vpack.c.bf16 %v709_v48, %v708_v42  ;;  %1092 = vmatpush3.bf16.msra.mxu1 %v750_v36 }
 0x139   :  { %v751_v26 = vpack.c.bf16 %v707_v50, %v706_v49  ;;  %1093 = vmatprep.subr.bf16.mxu1 %v1516_v63  ;;  %v1262_v63 = vmov 0.0  }
 0x13c   :  { %1094 = vmatpush3.bf16.msra.mxu1 %v751_v26 }
 0x13d   :  { %1095 = vmatprep.subr.bf16.mxu1 %v1514_v58 }
 0x140   :  { %1096 = vmatpush3.bf16.msra.mxu1 %v752_v51 }
 0x141   :  { %1097 = vmatprep.subr.bf16.mxu1 %v1530_v34 }
 0x144   :  { %1098 = vmatpush3.bf16.msra.mxu1 %v1472_v25  ;;  %v1236_v25 = vld [vmem:[%s1598_s4 + $0x8] sm:$0xff]   ;;  %s1264_s4 = smov [#allocation2]  }
 0x145   :  { %1099 = vmatprep.subr.bf16.mxu1 %v1528_v60  ;;  %s947_s23 = sshll.u32 %s1264_s4, 4  ;;  %s948_s23 = int_to_ptr.vmem [resolvable:$true] %s947_s23 }
 0x146   :  { %s1237_s24 = scalar_lea.vmem %s948_s23, 32  ;;  %p1242_p1 = scmp.lt.s32.totalorder %s948_s23, %s948_s23 }
 0x147   :  { %p1238_p0 = scmp.ne.s32.totalorder %s948_s23, %s1237_s24  ;;  %p1243_p2 = scmp.lt.s32.totalorder %s1237_s24, %s1237_s24 }
 0x148   :  { %1100 = vmatpush3.bf16.msra.mxu1 %v1468_v22 }
 0x149   :  { %1180 = vmatprep.subr.bf16.mxu1 %v1262_v63  ;;  %p1244_p3 = por %p1243_p2, %p1242_p1 }
 0x14b   :  { %865 = vmatmul.mubr.bf16.vlgmr.msra.gmra.mrb[24].mxu1 %v786_v46  ;;  %p1245_p4 = pnand %p1244_p3, %p1238_p0 }
 0x14c   :  { %1181 = vmatpush3.bf16.msra.mxu1 %v1235_v19  ;;  %1184 = vmatprep.mubr.msk.bf16.mxu1 %vm1263_vm2, %v1262_v63 }
 0x14d   :  { %1182 = vmatprep.subr.bf16.mxu1 %v1262_v63 }
 0x150   :  { %1183 = vmatpush3.bf16.msra.mxu1 %v1236_v25 }
 0x1fe   :  { %v1079_v58 = vpop.f32.mrb[20].mxu1 }
 0x1ff   :  { %v1080_v45 = vpop.f32.mrb[21].mxu1 }
 0x200   :  { %v1081_v60 = vadd.f32 %v1080_v45, %v1079_v58  ;;  %v1082_v22 = vpop.f32.mrb[22].mxu1 }
 0x201   :  { %v1083_v34 = vpop.f32.mrb[23].mxu1 }
 0x21e   :  { %v1101_v55 = vpop.f32.mrb[24].mxu1 }
 0x21f   :  { %v1102_v57 = vpop.f32.mrb[25].mxu1 }
 0x220   :  { %v1103_v61 = vadd.f32 %v1102_v57, %v1101_v55  ;;  %v1104_v23 = vpop.f32.mrb[26].mxu1 }
 0x221   :  { %v1105_v62 = vpop.f32.mrb[27].mxu1 }
 0x222   :  { %v867_v0 = vadd.f32 %v1103_v61, %v1081_v60 }
 0x224   :  { %v872_v1 = vpack.c.bf16 %v867_v0, %v867_v0 }
 0x226   :  { %1185 = vmatmul.mubr.msk.bf16.vlgmr.msra.gmra.mrb[28].mxu1 %vm896_vm3, %v872_v1 }
 0x2f9   :  { %v934_v21 = vpop.f32.mrb[28].mxu1 }
 0x2fa   :  { %v935_v3 = vadd.f32 %v1024_v2, %v934_v21  ;;  %v1186_v4 = vpop.f32.mrb[29].mxu1 }
 0x2fb   :  { %v937_v5 = vpop.f32.mrb[30].mxu1 }
 0x2fc   :  { %940 = vst [vmem:[#allocation2] sm:$0x3] %v935_v3  ;;  %v1187_v6 = vpop.f32.mrb[31].mxu1 }
 0x2fd   :  { %1248 = shalt.err (!%p1245_p4)
}
 0x2fe   :  { %s1249_s5 = scalar_lea.hbm %s1600_s6, 32 }
 0x2ff   :  { %p1250_p5 = scmp.ne.s32.totalorder %s1600_s6, %s1249_s5  ;;  %p1253_p6 = scmp.lt.u32.totalorder %s1249_s5, %s1600_s6 }
 0x301   :  { %p1255_p7 = pnand %p1253_p6, %p1250_p5 }
 0x303   :  { %1258 = shalt.err (!%p1255_p7)
}
 0x304   :  { %950 = dma.vmem_to_hbm [thread:$0]  %s948_s23, 32, %s1600_s6, [#allocation3]  }
 0x305   :  { %1259 = dma.done.wait [#allocation3], 32  }
 0x306   :  { %1260 = vsyncadd [#allocation3], 4294967264 }
 0x307   :  { %954 = vsyncpa [#allocation3], 1 }

</bundles_post_ra>
